<compile_context>
chip_gen: v5e
topology: v5e:2x2
jax: 0.10.0
libtpu: 0.0.40
codegen_flags: <defaults>
</compile_context>

<pallas_src>
import functools

import jax
import jax.numpy as jnp
import numpy as np
from jax.experimental import pallas as pl
from jax.experimental.pallas import tpu as pltpu


def _static_pow(x, n: int):
    """x ** n for a static python int n >= 1, via repeated squaring (VPU muls)."""
    assert isinstance(n, int) and n >= 1
    result = None
    base = x
    while n > 0:
        if n & 1:
            result = base if result is None else result * base
        n >>= 1
        if n > 0:
            base = base * base
    return result


def _hausdorff_kernel(dist_ref, p_ref, out_ref, acc_ref, *, alpha, eps, max_dist):
    b = pl.program_id(1)                         # reduction-axis position

    @pl.when(b == 0)
    def _():
        acc_ref[...] = jnp.full_like(acc_ref, jnp.inf)

    d = dist_ref[...]                            # (M, TN)  f32, lane-dense
    p = p_ref[...]                               # (1, TN)  f32

    # One reciprocal per pixel (EUP), instead of one divide per (pixel, target).
    pa = _static_pow(p, alpha)                   # static squarings -> VPU only
    inv = pl.reciprocal(pa + eps / max_dist, approx=False)      # (1, TN)
    denom = (d + eps) * inv                      # (M, TN) broadcast multiply (VPU)

    acc_ref[...] = jnp.minimum(acc_ref[...], denom)

    @pl.when(b == pl.num_programs(1) - 1)
    def _():
        m = jnp.min(acc_ref[...], axis=1, keepdims=True)        # (M, 1) XLU reduce
        out_ref[...] = jnp.broadcast_to(m, out_ref.shape)       # (M, 128) lane-dense store


def _choose_tile(N, M, budget_bytes):
    """Pick a lane tile TN along N from a VMEM budget.

    Double-buffered inputs: 2 * (M*TN + TN) f32; accumulator: M*TN f32.
    Returns (tn, nblocks, pad).
    """
    per_lane = (2 * (M + 1) + M) * 4
    cap = max(128, (budget_bytes // per_lane) // 128 * 128)
    if N <= cap:
        return N, 1, 0                          # single full-extent block (always legal)
    tn = cap                                    # multiple of 128
    nblocks = -(-N // tn)
    pad = nblocks * tn - N
    return tn, nblocks, pad


def hausdorff_forward(x, distances_mn, max_dist, *, alpha=4, eps=1e-6,
                      vmem_budget_bytes=12 * 1024 * 1024):
    """x: heatmap (H, W) (or anything flattening to N); distances_mn: (M, N)."""
    M, N = distances_mn.shape
    d = distances_mn.astype(jnp.float32)
    p = x.reshape(1, N).astype(jnp.float32)

    tn, nblocks, pad = _choose_tile(N, M, vmem_budget_bytes)
    if pad:
        # Padded positions get a huge distance / neutral pixel so they never win the min.
        d = jnp.pad(d, ((0, 0), (0, pad)), constant_values=1e30)
        p = jnp.pad(p, ((0, 0), (0, pad)), constant_values=1.0)

    # Split the reduction across TensorCores when possible (helps v7x megacore;
    # harmless on single-TC v5e / v6e).
    num_splits = 2 if (nblocks >= 2 and nblocks % 2 == 0) else 1
    blocks_per_split = nblocks // num_splits

    kernel = functools.partial(_hausdorff_kernel, alpha=int(alpha),
                               eps=float(eps), max_dist=float(max_dist))

    # Explicit scoped-VMEM limit sized from the tile footprint (covers v5e's 16 MiB
    # default and stays well under v7x's 64 MiB physical VMEM).
    footprint = (2 * (M + 1) * tn + M * tn + 2 * M * 128) * 4
    vmem_limit = int(min(max(1.5 * footprint + (2 << 20), 16 << 20), 48 << 20))

    partial = pl.pallas_call(
        kernel,
        out_shape=jax.ShapeDtypeStruct((M, num_splits * 128), jnp.float32),
        grid=(num_splits, blocks_per_split),
        in_specs=[
            pl.BlockSpec((M, tn), lambda s, b: (0, s * blocks_per_split + b)),
            pl.BlockSpec((1, tn), lambda s, b: (0, s * blocks_per_split + b)),
        ],
        out_specs=pl.BlockSpec((M, 128), lambda s, b: (0, s)),
        scratch_shapes=[pltpu.VMEM((M, tn), jnp.float32)],
        compiler_params=pltpu.CompilerParams(
            dimension_semantics=("parallel", "arbitrary"),
            vmem_limit_bytes=vmem_limit),
    )(d, p)

    # Combine per-split partial mins (each split's min is replicated over its 128
    # output lanes, so a plain min over the lane axis is correct), then clamp + mean.
    per_target_min = jnp.min(partial, axis=1)                    # (M,)
    clamped = jnp.clip(per_target_min, 0.0, float(max_dist))
    return jnp.mean(clamped)


def build_distances(input_hw, original_hw, target):
    """Replicates __init__ of AsymmetricHausdorfDistance; returns (M, N) distances."""
    H, W = input_hw
    scale = (jnp.asarray(original_hw, jnp.float32) /
             jnp.asarray(input_hw, jnp.float32)).reshape(1, 2)            # (1, 2)
    rows = jnp.broadcast_to(jnp.arange(H, dtype=jnp.float32)[:, None], (H, W))
    cols = jnp.broadcast_to(jnp.arange(W, dtype=jnp.float32)[None, :], (H, W))
    locs = jnp.stack([rows, cols], axis=2).reshape(-1, 2) * scale          # (N, 2)
    tgt = target.astype(jnp.float32) * scale                               # (M, 2)
    diff = tgt[:, None, :] - locs[None, :, :]                              # (M, N, 2)
    dist = jnp.sqrt(jnp.sum(diff * diff, axis=-1))                         # (M, N)
    max_dist = float(np.linalg.norm(np.asarray(original_hw, np.float32)))
    return dist, max_dist


def reference_forward(x, distances_mn, max_dist, *, alpha=4, eps=1e-6):
    p = x.reshape(1, -1).astype(jnp.float32)
    denom = (distances_mn + eps) / (p ** alpha + eps / max_dist)           # (M, N)
    dmin = jnp.min(denom, axis=1)
    dmin = jnp.clip(dmin, 0.0, max_dist)
    return jnp.mean(dmin)


if __name__ == "__main__":
    key = jax.random.PRNGKey(0)
    k_tgt, k_x, k_tgt2, k_x2 = jax.random.split(key, 4)

    # --- test 1: small demo size (single lane-dense block, grid=(1, 1)) ---
    input_hw = (16, 16)            # N = 256
    original_hw = (64, 64)
    n_targets = 8

    target = jax.random.uniform(k_tgt, (n_targets, 2), jnp.float32,
                                minval=0.0, maxval=float(input_hw[0]))
    x = jax.random.uniform(k_x, input_hw, jnp.float32)

    distances, max_dist = build_distances(input_hw, original_hw, target)

    result = jax.block_until_ready(hausdorff_forward(x, distances, max_dist, alpha=4))
    ref = reference_forward(x, distances, max_dist, alpha=4)
    assert np.allclose(np.asarray(result), np.asarray(ref), rtol=1e-5, atol=1e-5)

    # --- test 2: force tiling + padding + 2-way parallel split (exercises the
    #             multi-block / megacore code path with a tiny VMEM budget) ---
    input_hw2 = (20, 20)           # N = 400 -> tn=128, 4 blocks, pad=112, 2 splits
    original_hw2 = (80, 80)
    target2 = jax.random.uniform(k_tgt2, (n_targets, 2), jnp.float32,
                                 minval=0.0, maxval=float(input_hw2[0]))
    x2 = jax.random.uniform(k_x2, input_hw2, jnp.float32)
    distances2, max_dist2 = build_distances(input_hw2, original_hw2, target2)

    result2 = jax.block_until_ready(
        hausdorff_forward(x2, distances2, max_dist2, alpha=4,
                          vmem_budget_bytes=14_000))
    ref2 = reference_forward(x2, distances2, max_dist2, alpha=4)
    assert np.allclose(np.asarray(result2), np.asarray(ref2), rtol=1e-5, atol=1e-5)

    print("KERNEL_OK")
</pallas_src>

<mosaic_0001>
module attributes {stable_mosaic.version = 11 : i64} {
  func.func @_hausdorff_kernel(%arg0: i32, %arg1: i32, %arg2: memref<8x256xf32, #tpu.memory_space<vmem>>, %arg3: memref<1x256xf32, #tpu.memory_space<vmem>>, %arg4: memref<8x128xf32, #tpu.memory_space<vmem>>, %arg5: memref<8x256xf32, #tpu.memory_space<vmem>>) attributes {dimension_semantics = [#tpu.dimension_semantics<parallel>, #tpu.dimension_semantics<arbitrary>], iteration_bounds = array<i64: 1, 1>, scalar_prefetch = 0 : i64, scratch_operands = 1 : i64, tpu.core_type = #tpu.core_type<tc>, window_params = [{transform_indices = @transform_0, window_bounds = array<i64: 8, 256>}, {transform_indices = @transform_1, window_bounds = array<i64: 1, 256>}, {transform_indices = @transform_2, window_bounds = array<i64: 8, 128>}]} {
    %c0_i32 = arith.constant 0 : i32
    %0 = arith.cmpi eq, %arg1, %c0_i32 : i32
    %1 = arith.extui %0 : i1 to i32
    %c0_i32_0 = arith.constant 0 : i32
    %2 = arith.cmpi ne, %1, %c0_i32_0 : i32
    scf.if %2 {
      %cst_11 = arith.constant 0x7F800000 : f32
      %20 = vector.broadcast %cst_11 : f32 to vector<8x256xf32>
      %c0_12 = arith.constant 0 : index
      %c0_13 = arith.constant 0 : index
      %21 = vector.load %arg5[%c0_12, %c0_13] : memref<8x256xf32, #tpu.memory_space<vmem>>, vector<8x256xf32>
      tpu.vector_store %arg5[%c0_12, %c0_13], %20 {strides = array<i32>} : memref<8x256xf32, #tpu.memory_space<vmem>>, vector<8x256xf32>,
    } else {
    }
    %c0 = arith.constant 0 : index
    %c0_1 = arith.constant 0 : index
    %3 = vector.load %arg2[%c0, %c0_1] : memref<8x256xf32, #tpu.memory_space<vmem>>, vector<8x256xf32>
    %c0_2 = arith.constant 0 : index
    %c0_3 = arith.constant 0 : index
    %4 = vector.load %arg3[%c0_2, %c0_3] : memref<1x256xf32, #tpu.memory_space<vmem>>, vector<1x256xf32>
    %5 = arith.mulf %4, %4 : vector<1x256xf32>
    %6 = arith.mulf %5, %5 : vector<1x256xf32>
    %cst = arith.constant 1.10485434E-8 : f32
    %7 = vector.broadcast %cst : f32 to vector<1x256xf32>
    %8 = arith.addf %6, %7 : vector<1x256xf32>
    %9 = tpu.reciprocal %8 : vector<1x256xf32> -> vector<1x256xf32>
    %cst_4 = arith.constant 9.99999997E-7 : f32
    %10 = vector.broadcast %cst_4 : f32 to vector<8x256xf32>
    %11 = arith.addf %3, %10 : vector<8x256xf32>
    %12 = vector.broadcast %9 : vector<1x256xf32> to vector<8x256xf32>
    %13 = arith.mulf %11, %12 : vector<8x256xf32>
    %c0_5 = arith.constant 0 : index
    %c0_6 = arith.constant 0 : index
    %14 = vector.load %arg5[%c0_5, %c0_6] : memref<8x256xf32, #tpu.memory_space<vmem>>, vector<8x256xf32>
    %15 = arith.minimumf %14, %13 : vector<8x256xf32>
    %c0_7 = arith.constant 0 : index
    %c0_8 = arith.constant 0 : index
    %16 = vector.load %arg5[%c0_7, %c0_8] : memref<8x256xf32, #tpu.memory_space<vmem>>, vector<8x256xf32>
    tpu.vector_store %arg5[%c0_7, %c0_8], %15 {strides = array<i32>} : memref<8x256xf32, #tpu.memory_space<vmem>>, vector<8x256xf32>,
    %c0_i32_9 = arith.constant 0 : i32
    %17 = arith.cmpi eq, %arg1, %c0_i32_9 : i32
    %18 = arith.extui %17 : i1 to i32
    %c0_i32_10 = arith.constant 0 : i32
    %19 = arith.cmpi ne, %18, %c0_i32_10 : i32
    scf.if %19 {
      %c0_11 = arith.constant 0 : index
      %c0_12 = arith.constant 0 : index
      %20 = vector.load %arg5[%c0_11, %c0_12] : memref<8x256xf32, #tpu.memory_space<vmem>>, vector<8x256xf32>
      %cst_13 = arith.constant dense<0x7F800000> : vector<8xf32>
      %21 = vector.multi_reduction <minimumf>, %20, %cst_13 [1] : vector<8x256xf32> to vector<8xf32>
      %22 = vector.shape_cast %21 : vector<8xf32> to vector<8x1xf32>
      %23 = vector.shape_cast %22 : vector<8x1xf32> to vector<8x1xf32>
      %24 = vector.broadcast %23 : vector<8x1xf32> to vector<8x128xf32>
      %c0_14 = arith.constant 0 : index
      %c0_15 = arith.constant 0 : index
      %25 = vector.load %arg4[%c0_14, %c0_15] : memref<8x128xf32, #tpu.memory_space<vmem>>, vector<8x128xf32>
      tpu.vector_store %arg4[%c0_14, %c0_15], %24 {strides = array<i32>} : memref<8x128xf32, #tpu.memory_space<vmem>>, vector<8x128xf32>,
    } else {
    }
    return
  }
  func.func @transform_0(%arg0: i32, %arg1: i32) -> (i32, i32) {
    %c1_i32 = arith.constant 1 : i32
    %0 = arith.muli %arg0, %c1_i32 : i32
    %1 = arith.addi %0, %arg1 : i32
    %c0_i32 = arith.constant 0 : i32
    %c0_i32_0 = arith.constant 0 : i32
    return %c0_i32, %1 : i32, i32
  }
  func.func @transform_1(%arg0: i32, %arg1: i32) -> (i32, i32) {
    %c1_i32 = arith.constant 1 : i32
    %0 = arith.muli %arg0, %c1_i32 : i32
    %1 = arith.addi %0, %arg1 : i32
    %c0_i32 = arith.constant 0 : i32
    %c0_i32_0 = arith.constant 0 : i32
    return %c0_i32, %1 : i32, i32
  }
  func.func @transform_2(%arg0: i32, %arg1: i32) -> (i32, i32) {
    %c0_i32 = arith.constant 0 : i32
    %c0_i32_0 = arith.constant 0 : i32
    return %c0_i32, %arg0 : i32, i32
  }
}

</mosaic_0001>

<bundles_post_ra>
// kernel: tpu_custom_call.1
= control target key start
LH: loop header
LB: loop body
LE: loop exit
PB: predicated region body
PF: predicated region fallthrough
CT: control target
= control target key end

     0   :  { %7 = vsyncpa [#allocation4], 0  ;;  %s229_s0 = inlined_call_operand.hbm [shape: f32[8,256], index: 0, kind: input, shape index: {}]   ;;  %s230_s1 = inlined_call_operand.hbm [shape: f32[1,256], index: 1, kind: input, shape index: {}]   ;;  %s231_s2 = inlined_call_operand.hbm [shape: f32[8,128], index: 2, kind: output, shape index: {}]  }
   0x1   :  { %8 = vsyncpa [#allocation7], 0 }
   0x2   :  { %9 = vsyncpa [#allocation5], 0  ;;  %s19_s11 = sshll.u32 %s229_s0, 4  ;;  %s202_s12 = smov [#allocation3]   ;;  %s20_s11 = int_to_ptr.hbm [resolvable:$true] %s19_s11 }
   0x3   :  { %s21_s13 = sshll.u32 %s202_s12, 4  ;;  %s33_s16 = sshll.u32 %s230_s1, 4  ;;  %s22_s13 = int_to_ptr.vmem [resolvable:$true] %s21_s13  ;;  %s34_s16 = int_to_ptr.hbm [resolvable:$true] %s33_s16 }
   0x4   :  { %24 = dma.hbm_to_vmem [thread:$0]  %s20_s11, 256, %s22_s13, [#allocation4]  }
   0x5   :  { %s203_s17 = smov [#allocation6]  }
   0x6   :  { %s35_s18 = sshll.u32 %s203_s17, 4  ;;  %s36_s18 = int_to_ptr.vmem [resolvable:$true] %s35_s18 }
   0x7   :  { %38 = dma.hbm_to_vmem [thread:$0]  %s34_s16, 32, %s36_s18, [#allocation7]  }
   0x8   :  { %196 = dma.done.wait [#allocation4], 256  }
   0x9   :  { %197 = vsyncadd [#allocation4], 4294967040 }
   0xa   :  { %198 = dma.done.wait [#allocation7], 32  }
   0xb   :  { %199 = vsyncadd [#allocation7], 4294967264  ;;  %v59_v0 = vld [vmem:[#allocation6] sm:$0x3]  ;;  %v57_v10 = vld [vmem:[#allocation3] sm:$0xff]  ;;  %s204_s0 = smov [#allocation8]  }
   0xc   :  { %v60_v1 = vmul.f32 %v59_v0, %v59_v0  ;;  %v58_v11 = vld [vmem:[#allocation3 + $0x8] sm:$0xff]  ;;  %v77_v15 = vadd.f32 1e-06, %v57_v10  ;;  %s106_s1 = sshll.u32 %s204_s0, 4  ;;  %s108_s21 = sshll.u32 %s231_s2, 4  ;;  %s107_s1 = int_to_ptr.vmem [resolvable:$true] %s106_s1  ;;  %s109_s21 = int_to_ptr.hbm [resolvable:$true] %s108_s21 }
   0xd   :  { %v78_v16 = vadd.f32 1e-06, %v58_v11 }
   0xe   :  { %v61_v2 = vmul.f32 %v60_v1, %v60_v1 }
  0x10   :  { %v62_v3 = vadd.f32 1.1048543e-08, %v61_v2 }
  0x12   :  { %122 = vrcp.f32 %v62_v3  ;;  %v74_v6 = vand.u32 2147483648, %v62_v3  ;;  %vm68_vm0 = vweird.f32 %v62_v3  ;;  %v72_v8 = vand.u32 2147483647, %v62_v3 }
  0x14   :  { %v75_v12 = vor.u32 1.1754944e-38, %v74_v6  ;;  %vm73_vm3 = vcmp.eq.f32.partialorder %v72_v8, 8.507059e+37 }
  0x18   :  { %v123_v4 = vpop.eup %122 }
  0x19   :  { %v64_v5 = vmul.f32 %v123_v4, %v62_v3  ;;  %vm69_vm1 = vweird.f32 %v123_v4 }
  0x1a   :  { %vm70_vm2 = vmor %vm68_vm0, %vm69_vm1 }
  0x1b   :  { %v65_v7 = vsub.f32 1.0, %v64_v5 }
  0x1d   :  { %v66_v9 = vmul.f32 %v123_v4, %v65_v7 }
  0x1f   :  { %v67_v13 = vadd.f32 %v123_v4, %v66_v9 }
  0x21   :  { %v71_v14 = vsel %vm70_vm2, %v123_v4, %v67_v13 }
  0x22   :  { %v76_v17 = vsel %vm73_vm3, %v75_v12, %v71_v14 }
  0x23   :  { %v80_v18 = vperm.slane %v76_v17, 0  ;;  %v81_v19 = vperm.slane %v76_v17, 1 }
  0x25   :  { %v84_v20 = vmul.f32 %v80_v18, %v77_v15  ;;  %v85_v21 = vmul.f32 %v81_v19, %v78_v16 }
  0x27   :  { %v97_v22 = vmin.f32 %v84_v20, %v85_v21 }
  0x29   :  { %98 = vmin.xlane.f32.xlu0 %v97_v22 }
  0x9c   :  { %v99_v23 = vpop.xlane.xlu0 %98 }
  0x9d   :  { %100 = vst [vmem:[#allocation8] sm:$0xff] %v99_v23 }
  0x9e   :  { %111 = dma.vmem_to_hbm [thread:$0]  %s107_s1, 128, %s109_s21, [#allocation5]  }
  0x9f   :  { %200 = dma.done.wait [#allocation5], 128  }
  0xa0   :  { %201 = vsyncadd [#allocation5], 4294967168 }
  0xa1   :  { %116 = vsyncpa [#allocation4], 1 }
  0xa2   :  { %117 = vsyncpa [#allocation7], 1 }
  0xa3   :  { %118 = vsyncpa [#allocation5], 1 }

</bundles_post_ra>
